<compile_context>
chip_gen: v6e
topology: v6e:2x2x1
jax: 0.10.0
libtpu: 0.0.40
codegen_flags: <defaults>
</compile_context>

<pallas_src>
import jax
import jax.numpy as jnp
from jax.experimental import pallas as pl
from jax.experimental.pallas import tpu as pltpu

# Module hyper-parameters (defaults of NormalizedFocalLossSigmoid.__init__).
_ALPHA = 0.25
_GAMMA = 2              # == 2 -> (1 - pt) * (1 - pt)
_EPS = 1e-12
_IGNORE_LABEL = -1.0
_WEIGHT = 1.0           # weight=None -> 1.0
# from_sigmoid=False, detach_delimeter=True (fwd no-op), max_mult=-1 (no clamp),
# size_average=True, batch_axis=0 are baked into the kernel below.

_LANE = 128
_SUB = 8
_TARGET_BLOCK_BYTES = 4 * 1024 * 1024   # ~4 MiB per-input block target


def _cdiv(a, b):
    return -(-a // b)


def _round_up(x, m):
    return _cdiv(x, m) * m


def _make_kernel(S, rows, tr, tile_s, n_tiles, need_col_mask, need_row_mask):
    """Build the accumulating-reduction kernel for static shape parameters."""

    def kernel(pred_ref, label_ref, sw_ref, beta_ref, loss_ref):
        t = pl.program_id(2)

        @pl.when(t == 0)
        def _init():
            sw_ref[...] = jnp.zeros_like(sw_ref)
            beta_ref[...] = jnp.zeros_like(beta_ref)
            loss_ref[...] = jnp.zeros_like(loss_ref)

        pred = pred_ref[...]
        label = label_ref[...]
        labf = label.astype(jnp.float32)          # exact for {-1, 0, 1}

        one_hot = labf > 0.5
        sw_bool = labf != _IGNORE_LABEL           # exact float compare (torch)

        # Ragged tails handled in-kernel (no wrapper jnp.pad / extra HBM copy).
        # Masked positions force sw=0 -> alpha=0, pt=1, beta=0, loss=0, so any
        # garbage read from partial edge blocks contributes exactly zero.
        if need_col_mask:
            col0 = (pl.program_id(0) * n_tiles + t) * tile_s   # unclamped start
            col = jax.lax.broadcasted_iota(jnp.int32, (tr, tile_s), 1) + col0
            sw_bool = jnp.logical_and(sw_bool, col < S)
        if need_row_mask:
            row0 = pl.program_id(1) * tr
            row = jax.lax.broadcasted_iota(jnp.int32, (tr, tile_s), 0) + row0
            sw_bool = jnp.logical_and(sw_bool, row < rows)
        sw = sw_bool.astype(jnp.float32)

        if pred.dtype == jnp.bfloat16:
            # bf16 VALU/EUP path (v6e/v7x): sigmoid + |label - p| in bf16,
            # f32 from pt onward (eps=1e-12 underflows in bf16).
            d = jnp.abs(label.astype(jnp.bfloat16) - jax.nn.sigmoid(pred))
            d = d.astype(jnp.float32)
        else:
            d = jnp.abs(labf - jax.nn.sigmoid(pred.astype(jnp.float32)))

        # sample_weight folded into alpha (sw in {0,1}); the reference's final
        # `loss * sample_weight` is therefore redundant and dropped.
        alpha = jnp.where(one_hot, _ALPHA, 1.0 - _ALPHA) * sw
        pt = jnp.where(sw_bool, 1.0 - d, 1.0)
        one_m_pt = 1.0 - pt
        beta = one_m_pt * one_m_pt                # gamma == 2
        loss_raw = alpha * beta * jnp.log(jnp.minimum(pt + _EPS, 1.0))

        # Per-(b,c) partial sums accumulated into the resident output blocks.
        sw_ref[...] += jnp.sum(sw, axis=-1, keepdims=True)
        beta_ref[...] += jnp.sum(beta, axis=-1, keepdims=True)
        loss_ref[...] += jnp.sum(loss_raw, axis=-1, keepdims=True)

    return kernel


def _choose_tiling(rows, S, itemsize):
    """Pick (row_block tr, num_row_blocks RB, spatial splits P, tile_s, n_tiles)."""
    budget_elems = max(_TARGET_BLOCK_BYTES // itemsize, _SUB * _LANE)
    lane_tiles_total = _cdiv(S, _LANE)

    # Row block: the whole (B*C) row range when it fits against a minimum
    # 128-lane tile, otherwise a sublane-dense multiple of 8 (ragged tail is
    # masked in-kernel, never padded in HBM).
    max_tr = max(_SUB, budget_elems // _LANE)
    if rows <= max_tr:
        tr, RB = rows, 1
    else:
        tr = max(_SUB, min((max_tr // _SUB) * _SUB, 1024))
        RB = _cdiv(rows, tr)

    if lane_tiles_total <= 1:
        # Single lane tile: exact spatial extent (S may be < 128).
        return tr, RB, 1, S, 1

    # Megacore: guarantee >=2 'parallel' grid steps (v7x has 2 TensorCores) by
    # splitting the spatial reduction in two when the row axis gives only one
    # block; the two partials are summed in the wrapper.
    P = 2 if RB == 1 else 1

    lane_tiles_half = _cdiv(lane_tiles_total, P)
    tr_phys = _round_up(tr, _SUB)
    lanes_budget = max(_LANE, (budget_elems // tr_phys) // _LANE * _LANE)
    tiles_per_blk = max(1, min(lane_tiles_half, lanes_budget // _LANE))
    n_tiles = _cdiv(lane_tiles_half, tiles_per_blk)
    tiles_per_blk = _cdiv(lane_tiles_half, n_tiles)   # spread evenly
    tile_s = tiles_per_blk * _LANE
    return tr, RB, P, tile_s, n_tiles


def normalized_focal_loss(pred, label):
    """pred, label: (B, C, H, W). Returns float32 (B,) per-batch loss."""
    B, C, H, W = pred.shape
    S = H * W
    rows = B * C

    # Lane-dense 2D view; contiguous reshape, no HBM copy, no padding.
    p2 = pred.reshape(rows, S)
    l2 = label.reshape(rows, S)

    it_p = jnp.dtype(pred.dtype).itemsize
    it_l = jnp.dtype(label.dtype).itemsize
    tr, RB, P, tile_s, n_tiles = _choose_tiling(rows, S, max(it_p, it_l))

    num_sb = _cdiv(S, tile_s)                 # number of real spatial blocks
    need_clamp = P * n_tiles > num_sb         # redundant trailing blocks exist
    need_col_mask = P * n_tiles * tile_s != S
    need_row_mask = RB * tr != rows

    if need_clamp:
        def in_map(p, r, t):
            return (r, jnp.minimum(p * n_tiles + t, num_sb - 1))
    else:
        def in_map(p, r, t):
            return (r, p * n_tiles + t)

    def out_map(p, r, t):
        return (p, r, 0)

    kernel = _make_kernel(S, rows, tr, tile_s, n_tiles,
                          need_col_mask, need_row_mask)

    # VMEM accounting from *physical* (sublane/lane-padded) block bytes:
    # 2 inputs x 2 pipeline buffers, plus the tiny per-row output blocks.
    tr_phys = _round_up(tr, _SUB)
    ts_phys = _round_up(tile_s, _LANE)
    in_phys = 2 * tr_phys * ts_phys * (it_p + it_l)
    out_phys = 2 * 3 * tr_phys * _LANE * 4
    vmem_limit = int(min(40 << 20, max(8 << 20, in_phys + out_phys + (2 << 20))))

    out_sd = jax.ShapeDtypeStruct((P, RB * tr, 1), jnp.float32)
    out_spec = pl.BlockSpec((None, tr, 1), out_map)

    sw_s, beta_s, loss_s = pl.pallas_call(
        kernel,
        out_shape=(out_sd, out_sd, out_sd),
        grid_spec=pltpu.PrefetchScalarGridSpec(
            num_scalar_prefetch=0,
            grid=(P, RB, n_tiles),
            in_specs=[
                pl.BlockSpec((tr, tile_s), in_map),
                pl.BlockSpec((tr, tile_s), in_map),
            ],
            out_specs=[out_spec, out_spec, out_spec],
        ),
        compiler_params=pltpu.CompilerParams(
            dimension_semantics=("parallel", "parallel", "arbitrary"),
            vmem_limit_bytes=vmem_limit,
        ),
    )(p2, l2)

    # Tiny per-(b, c) finalisation in plain JAX (combines the P spatial halves).
    def fold(x):
        return x.reshape(P, RB * tr)[:, :rows].sum(axis=0).reshape(B, C)

    sw_bc = fold(sw_s)        # sum(sample_weight)                       per (b,c)
    beta_bc = fold(beta_s)    # sum(beta_raw)                            per (b,c)
    loss_bc = fold(loss_s)    # sum(alpha*beta_raw*log(min(pt+eps, 1)))  per (b,c)

    # detach_delimeter=True: mult is a constant in fwd; max_mult=-1: no clamp.
    mult = sw_bc / (beta_bc + _EPS)
    loss_b = jnp.sum(loss_bc * mult, axis=1)
    bsum_b = jnp.sum(sw_bc, axis=1)
    return (-_WEIGHT) * loss_b / (bsum_b + _EPS)     # size_average=True
    # TODO(synk): the torch.no_grad() running stats (_k_sum / _m_max EMA via
    # .cpu().numpy()) are host-side training bookkeeping and do not affect the
    # returned loss; they are not reproduced here.


def _reference(pred, label):
    """Pure-JAX reference mirroring the PyTorch forward exactly."""
    one_hot = label > 0.5
    sw_bool = label != _IGNORE_LABEL
    sw = sw_bool.astype(jnp.float32)
    p = jax.nn.sigmoid(pred)
    alpha = jnp.where(one_hot, _ALPHA * sw, (1.0 - _ALPHA) * sw)
    pt = jnp.where(sw_bool, 1.0 - jnp.abs(label - p), jnp.ones_like(p))
    beta = (1.0 - pt) ** _GAMMA
    sw_sum = jnp.sum(sw, axis=(-2, -1), keepdims=True)
    beta_sum = jnp.sum(beta, axis=(-2, -1), keepdims=True)
    mult = sw_sum / (beta_sum + _EPS)
    beta = beta * mult
    loss = -alpha * beta * jnp.log(jnp.minimum(pt + _EPS, 1.0))
    loss = _WEIGHT * (loss * sw)
    bsum = jnp.sum(sw, axis=(1, 2, 3))
    return jnp.sum(loss, axis=(1, 2, 3)) / (bsum + _EPS)


if __name__ == "__main__":
    key = jax.random.PRNGKey(0)
    k_pred, k_label = jax.random.split(key)

    B, C, H, W = 2, 4, 16, 16
    pred = jax.random.normal(k_pred, (B, C, H, W), dtype=jnp.float32)
    # labels in {-1 (ignore), 0, 1}, like a segmentation target with ignore px
    label = jax.random.randint(k_label, (B, C, H, W), -1, 2).astype(jnp.float32)

    out = normalized_focal_loss(pred, label)
    jax.block_until_ready(out)

    ref = _reference(pred, label)
    assert out.shape == (B,)
    assert jnp.allclose(out, ref, rtol=1e-4, atol=1e-6), (out, ref)
    print("KERNEL_OK")
</pallas_src>

<mosaic_0001>
module attributes {stable_mosaic.version = 11 : i64} {
  func.func @kernel(%arg0: i32, %arg1: i32, %arg2: i32, %arg3: memref<8x128xf32, #tpu.memory_space<vmem>>, %arg4: memref<8x128xf32, #tpu.memory_space<vmem>>, %arg5: memref<1x8x1xf32, #tpu.memory_space<vmem>>, %arg6: memref<1x8x1xf32, #tpu.memory_space<vmem>>, %arg7: memref<1x8x1xf32, #tpu.memory_space<vmem>>) attributes {dimension_semantics = [#tpu.dimension_semantics<parallel>, #tpu.dimension_semantics<parallel>, #tpu.dimension_semantics<arbitrary>], iteration_bounds = array<i64: 2, 1, 1>, scalar_prefetch = 0 : i64, scratch_operands = 0 : i64, tpu.core_type = #tpu.core_type<tc>, window_params = [{transform_indices = @transform_0, window_bounds = array<i64: 8, 128>}, {transform_indices = @transform_1, window_bounds = array<i64: 8, 128>}, {transform_indices = @transform_2, window_bounds = array<i64: 1, 8, 1>}, {transform_indices = @transform_3, window_bounds = array<i64: 1, 8, 1>}, {transform_indices = @transform_4, window_bounds = array<i64: 1, 8, 1>}]} {
    %c0_i32 = arith.constant 0 : i32
    %0 = arith.cmpi eq, %arg2, %c0_i32 : i32
    %1 = arith.extui %0 : i1 to i32
    %c0_i32_0 = arith.constant 0 : i32
    %2 = arith.cmpi ne, %1, %c0_i32_0 : i32
    scf.if %2 {
      %cst_34 = arith.constant 0.000000e+00 : f32
      %60 = vector.broadcast %cst_34 : f32 to vector<8x1xf32>
      %c0_35 = arith.constant 0 : index
      %c0_36 = arith.constant 0 : index
      %c0_37 = arith.constant 0 : index
      %61 = vector.load %arg5[%c0_35, %c0_36, %c0_37] : memref<1x8x1xf32, #tpu.memory_space<vmem>>, vector<1x8x1xf32>
      %62 = vector.shape_cast %61 : vector<1x8x1xf32> to vector<8x1xf32>
      %63 = vector.shape_cast %60 : vector<8x1xf32> to vector<1x8x1xf32>
      tpu.vector_store %arg5[%c0_35, %c0_36, %c0_37], %63 {strides = array<i32>} : memref<1x8x1xf32, #tpu.memory_space<vmem>>, vector<1x8x1xf32>,
      %cst_38 = arith.constant 0.000000e+00 : f32
      %64 = vector.broadcast %cst_38 : f32 to vector<8x1xf32>
      %c0_39 = arith.constant 0 : index
      %c0_40 = arith.constant 0 : index
      %c0_41 = arith.constant 0 : index
      %65 = vector.load %arg6[%c0_39, %c0_40, %c0_41] : memref<1x8x1xf32, #tpu.memory_space<vmem>>, vector<1x8x1xf32>
      %66 = vector.shape_cast %65 : vector<1x8x1xf32> to vector<8x1xf32>
      %67 = vector.shape_cast %64 : vector<8x1xf32> to vector<1x8x1xf32>
      tpu.vector_store %arg6[%c0_39, %c0_40, %c0_41], %67 {strides = array<i32>} : memref<1x8x1xf32, #tpu.memory_space<vmem>>, vector<1x8x1xf32>,
      %cst_42 = arith.constant 0.000000e+00 : f32
      %68 = vector.broadcast %cst_42 : f32 to vector<8x1xf32>
      %c0_43 = arith.constant 0 : index
      %c0_44 = arith.constant 0 : index
      %c0_45 = arith.constant 0 : index
      %69 = vector.load %arg7[%c0_43, %c0_44, %c0_45] : memref<1x8x1xf32, #tpu.memory_space<vmem>>, vector<1x8x1xf32>
      %70 = vector.shape_cast %69 : vector<1x8x1xf32> to vector<8x1xf32>
      %71 = vector.shape_cast %68 : vector<8x1xf32> to vector<1x8x1xf32>
      tpu.vector_store %arg7[%c0_43, %c0_44, %c0_45], %71 {strides = array<i32>} : memref<1x8x1xf32, #tpu.memory_space<vmem>>, vector<1x8x1xf32>,
    } else {
    }
    %c0 = arith.constant 0 : index
    %c0_1 = arith.constant 0 : index
    %3 = vector.load %arg3[%c0, %c0_1] : memref<8x128xf32, #tpu.memory_space<vmem>>, vector<8x128xf32>
    %c0_2 = arith.constant 0 : index
    %c0_3 = arith.constant 0 : index
    %4 = vector.load %arg4[%c0_2, %c0_3] : memref<8x128xf32, #tpu.memory_space<vmem>>, vector<8x128xf32>
    %cst = arith.constant 5.000000e-01 : f32
    %5 = vector.broadcast %cst : f32 to vector<8x128xf32>
    %6 = arith.cmpf ogt, %4, %5 : vector<8x128xf32>
    %cst_4 = arith.constant -1.000000e+00 : f32
    %7 = vector.broadcast %cst_4 : f32 to vector<8x128xf32>
    %8 = arith.cmpf one, %4, %7 : vector<8x128xf32>
    %9 = arith.extui %8 : vector<8x128xi1> to vector<8x128xi32>
    %10 = arith.sitofp %9 : vector<8x128xi32> to vector<8x128xf32>
    %11 = arith.negf %3 : vector<8x128xf32>
    %12 = math.exp %11 : vector<8x128xf32>
    %cst_5 = arith.constant 1.000000e+00 : f32
    %13 = vector.broadcast %cst_5 : f32 to vector<8x128xf32>
    %14 = arith.addf %13, %12 : vector<8x128xf32>
    %15 = arith.divf %13, %14 : vector<8x128xf32>
    %16 = arith.subf %4, %15 : vector<8x128xf32>
    %17 = math.absf %16 : vector<8x128xf32>
    %cst_6 = arith.constant 2.500000e-01 : f32
    %cst_7 = arith.constant 7.500000e-01 : f32
    %18 = vector.broadcast %cst_6 : f32 to vector<8x128xf32>
    %19 = vector.broadcast %cst_7 : f32 to vector<8x128xf32>
    %20 = arith.select %6, %18, %19 : vector<8x128xi1>, vector<8x128xf32>
    %21 = arith.mulf %20, %10 : vector<8x128xf32>
    %cst_8 = arith.constant 1.000000e+00 : f32
    %22 = vector.broadcast %cst_8 : f32 to vector<8x128xf32>
    %23 = arith.subf %22, %17 : vector<8x128xf32>
    %cst_9 = arith.constant 1.000000e+00 : f32
    %24 = vector.broadcast %cst_9 : f32 to vector<8x128xf32>
    %25 = arith.select %8, %23, %24 : vector<8x128xi1>, vector<8x128xf32>
    %cst_10 = arith.constant 1.000000e+00 : f32
    %26 = vector.broadcast %cst_10 : f32 to vector<8x128xf32>
    %27 = arith.subf %26, %25 : vector<8x128xf32>
    %28 = arith.mulf %27, %27 : vector<8x128xf32>
    %29 = arith.mulf %21, %28 : vector<8x128xf32>
    %cst_11 = arith.constant 9.99999996E-13 : f32
    %30 = vector.broadcast %cst_11 : f32 to vector<8x128xf32>
    %31 = arith.addf %25, %30 : vector<8x128xf32>
    %cst_12 = arith.constant 1.000000e+00 : f32
    %32 = vector.broadcast %cst_12 : f32 to vector<8x128xf32>
    %33 = arith.minimumf %31, %32 : vector<8x128xf32>
    %34 = math.log %33 : vector<8x128xf32>
    %35 = arith.mulf %29, %34 : vector<8x128xf32>
    %c0_13 = arith.constant 0 : index
    %c0_14 = arith.constant 0 : index
    %c0_15 = arith.constant 0 : index
    %36 = vector.load %arg5[%c0_13, %c0_14, %c0_15] : memref<1x8x1xf32, #tpu.memory_space<vmem>>, vector<1x8x1xf32>
    %37 = vector.shape_cast %36 : vector<1x8x1xf32> to vector<8x1xf32>
    %cst_16 = arith.constant dense<0.000000e+00> : vector<8xf32>
    %38 = vector.multi_reduction <add>, %10, %cst_16 [1] : vector<8x128xf32> to vector<8xf32>
    %39 = vector.shape_cast %38 : vector<8xf32> to vector<8x1xf32>
    %40 = arith.addf %37, %39 : vector<8x1xf32>
    %c0_17 = arith.constant 0 : index
    %c0_18 = arith.constant 0 : index
    %c0_19 = arith.constant 0 : index
    %41 = vector.load %arg5[%c0_17, %c0_18, %c0_19] : memref<1x8x1xf32, #tpu.memory_space<vmem>>, vector<1x8x1xf32>
    %42 = vector.shape_cast %41 : vector<1x8x1xf32> to vector<8x1xf32>
    %43 = vector.shape_cast %40 : vector<8x1xf32> to vector<1x8x1xf32>
    tpu.vector_store %arg5[%c0_17, %c0_18, %c0_19], %43 {strides = array<i32>} : memref<1x8x1xf32, #tpu.memory_space<vmem>>, vector<1x8x1xf32>,
    %c0_20 = arith.constant 0 : index
    %c0_21 = arith.constant 0 : index
    %c0_22 = arith.constant 0 : index
    %44 = vector.load %arg6[%c0_20, %c0_21, %c0_22] : memref<1x8x1xf32, #tpu.memory_space<vmem>>, vector<1x8x1xf32>
    %45 = vector.shape_cast %44 : vector<1x8x1xf32> to vector<8x1xf32>
    %cst_23 = arith.constant dense<0.000000e+00> : vector<8xf32>
    %46 = vector.multi_reduction <add>, %28, %cst_23 [1] : vector<8x128xf32> to vector<8xf32>
    %47 = vector.shape_cast %46 : vector<8xf32> to vector<8x1xf32>
    %48 = arith.addf %45, %47 : vector<8x1xf32>
    %c0_24 = arith.constant 0 : index
    %c0_25 = arith.constant 0 : index
    %c0_26 = arith.constant 0 : index
    %49 = vector.load %arg6[%c0_24, %c0_25, %c0_26] : memref<1x8x1xf32, #tpu.memory_space<vmem>>, vector<1x8x1xf32>
    %50 = vector.shape_cast %49 : vector<1x8x1xf32> to vector<8x1xf32>
    %51 = vector.shape_cast %48 : vector<8x1xf32> to vector<1x8x1xf32>
    tpu.vector_store %arg6[%c0_24, %c0_25, %c0_26], %51 {strides = array<i32>} : memref<1x8x1xf32, #tpu.memory_space<vmem>>, vector<1x8x1xf32>,
    %c0_27 = arith.constant 0 : index
    %c0_28 = arith.constant 0 : index
    %c0_29 = arith.constant 0 : index
    %52 = vector.load %arg7[%c0_27, %c0_28, %c0_29] : memref<1x8x1xf32, #tpu.memory_space<vmem>>, vector<1x8x1xf32>
    %53 = vector.shape_cast %52 : vector<1x8x1xf32> to vector<8x1xf32>
    %cst_30 = arith.constant dense<0.000000e+00> : vector<8xf32>
    %54 = vector.multi_reduction <add>, %35, %cst_30 [1] : vector<8x128xf32> to vector<8xf32>
    %55 = vector.shape_cast %54 : vector<8xf32> to vector<8x1xf32>
    %56 = arith.addf %53, %55 : vector<8x1xf32>
    %c0_31 = arith.constant 0 : index
    %c0_32 = arith.constant 0 : index
    %c0_33 = arith.constant 0 : index
    %57 = vector.load %arg7[%c0_31, %c0_32, %c0_33] : memref<1x8x1xf32, #tpu.memory_space<vmem>>, vector<1x8x1xf32>
    %58 = vector.shape_cast %57 : vector<1x8x1xf32> to vector<8x1xf32>
    %59 = vector.shape_cast %56 : vector<8x1xf32> to vector<1x8x1xf32>
    tpu.vector_store %arg7[%c0_31, %c0_32, %c0_33], %59 {strides = array<i32>} : memref<1x8x1xf32, #tpu.memory_space<vmem>>, vector<1x8x1xf32>,
    return
  }
  func.func @transform_0(%arg0: i32, %arg1: i32, %arg2: i32) -> (i32, i32) {
    %c1_i32 = arith.constant 1 : i32
    %0 = arith.muli %arg0, %c1_i32 : i32
    %1 = arith.addi %0, %arg2 : i32
    %c0_i32 = arith.constant 0 : i32
    return %arg1, %1 : i32, i32
  }
  func.func @transform_1(%arg0: i32, %arg1: i32, %arg2: i32) -> (i32, i32) {
    %c1_i32 = arith.constant 1 : i32
    %0 = arith.muli %arg0, %c1_i32 : i32
    %1 = arith.addi %0, %arg2 : i32
    %c0_i32 = arith.constant 0 : i32
    return %arg1, %1 : i32, i32
  }
  func.func @transform_2(%arg0: i32, %arg1: i32, %arg2: i32) -> (i32, i32, i32) {
    %c0_i32 = arith.constant 0 : i32
    %c0_i32_0 = arith.constant 0 : i32
    return %arg0, %arg1, %c0_i32 : i32, i32, i32
  }
  func.func @transform_3(%arg0: i32, %arg1: i32, %arg2: i32) -> (i32, i32, i32) {
    %c0_i32 = arith.constant 0 : i32
    %c0_i32_0 = arith.constant 0 : i32
    return %arg0, %arg1, %c0_i32 : i32, i32, i32
  }
  func.func @transform_4(%arg0: i32, %arg1: i32, %arg2: i32) -> (i32, i32, i32) {
    %c0_i32 = arith.constant 0 : i32
    %c0_i32_0 = arith.constant 0 : i32
    return %arg0, %arg1, %c0_i32 : i32, i32, i32
  }
}

</mosaic_0001>

<bundles_post_ra>
// kernel: tpu_custom_call.1
= control target key start
LH: loop header
LB: loop body
LE: loop exit
PB: predicated region body
PF: predicated region fallthrough
CT: control target
= control target key end

     0   :  { %10 = vsyncpa [#allocation3], 0  ;;  %s957_s0 = inlined_call_operand.hbm [shape: f32[8,256], index: 0, kind: input, shape index: {}]   ;;  %s958_s1 = inlined_call_operand.hbm [shape: f32[8,256], index: 1, kind: input, shape index: {}]   ;;  %s959_s2 = inlined_call_operand.vmem [shape: f32[2,8,1], index: 2, kind: output, shape index: {0}]   ;;  %s960_s3 = inlined_call_operand.vmem [shape: f32[2,8,1], index: 3, kind: output, shape index: {1}]   ;;  %s961_s4 = inlined_call_operand.vmem [shape: f32[2,8,1], index: 4, kind: output, shape index: {2}]  }
   0x1   :  { %12 = vsyncpa [#allocation3 + $0x1], 0 }
   0x2   :  { %13 = vsyncpa [#allocation5], 0 }
   0x3   :  { %15 = vsyncpa [#allocation5 + $0x1], 0  ;;  %s804_s15 = smov 0   ;;  %s806_s16 = smov 0  }
   0x4   :  { %s808_s17 = smov 0   ;;  %s810_s18 = smov 0  }
   0x5   :  { %s812_s19 = smov 0   ;;  %s814_s20 = smov 0  }
   0x6 LB: > { %s577_s21 = sadd.s32 4294967295, %s773_s20   ;;  %s40_s22 = sadd.s32 1, %s769_s19  ;;  %s773_s20 = sphi %s814_s20, %s21_s20   ;;  %s769_s19 = sphi %s812_s19, %s970_s19   ;;  %s765_s18 = sphi %s810_s18, %s969_s18   ;;  %s761_s17 = sphi %s808_s17, %s968_s17   ;;  %s757_s16 = sphi %s806_s16, %s967_s16   ;;  %s753_s15 = sphi %s804_s15, %s966_s15  }
   0x7   : > { %p42_p0 = scmp.ge.s32.totalorder %s40_s22, 2  ;;  %s51_s23 = sadd.s32 1, %s761_s17 }
   0x8   : > { %p58_p1 = scmp.ne.s32.totalorder %s761_s17, %s757_s16  ;;  %p59_p2 = scmp.eq.s32.totalorder %s773_s20, 0 }
   0x9   : > { %s972_s22 = smov (%p42_p0, %s40_s22), 0  ;;  %p64_p4 = scmp.ne.s32.totalorder %s757_s16, %s753_s15 }
   0xa   : > { %p840_p3 = por %p59_p2, %p58_p1  ;;  %s47_s25 = ssub.s32 %s769_s19, %s972_s22 }
   0xb   : > { %p65_p5 = scmp.eq.s32.totalorder %s577_s21, 0  ;;  %p49_p6 = scmp.eq.s32.totalorder %s47_s25, 0 }
   0xc   : > { %p606_p8 = scmp.lt.s32.totalorder %s773_s20, 2  ;;  %s856_s28 = sand.u32 1, %s761_s17  }
   0xd   : > { %p847_p7 = por %p65_p5, %p64_p4  ;;  %s582_s29 = sshll.u32 %s769_s19, 7 }
   0xe   : > { %s853_s27 = scalar_select %p49_p6, %s761_s17, %s51_s23  }
   0xf   : > { %s581_s30 = sshll.u32 %s856_s28, 3  ;;  %s214_s7 = scalar_lea.hbm %s957_s0, %s582_s29 }
  0x10   : > { %s206_s8 = scalar_lea.vmem [#allocation2], %s581_s30  ;;  %p865_p9 = pnand %p606_p8, %p840_p3 }
  0x11   : > { %s216_s9 = sshll.u32 %s206_s8, 4  ;;  %p585_p10 = scmp.ge.s32.totalorder %s773_s20, 1  ;;  %s217_s9 = int_to_ptr.vmem [resolvable:$true] %s216_s9 }
  0x12   : > { %p242_p11 = scmp.lt.s32.totalorder %s773_s20, 3  ;;  %s203_s11 = scalar_lea.sflag [#allocation3], %s856_s28 }
  0x13   : > { %p665_p12 = pneg %p865_p9  ;;  %s676_s12 = scalar_lea.vmem %s217_s9, 128 }
  0x14   : > { %p677_p13 = scmp.ne.s32.totalorder %s217_s9, %s676_s12  ;;  %s775_s13 = smov [#allocation2]  }
  0x15   : > { %s681_s14 = sshll.u32 %s775_s13, 4  ;;  %s682_s14 = int_to_ptr.vmem [resolvable:$false] %s681_s14 }
  0x16   : > { %p679_p0 = pnand %p677_p13, %p665_p12  ;;  %s683_s15 = scalar_lea.vmem %s682_s14, 256 }
  0x17   : > { %p684_p2 = scmp.lt.s32.totalorder %s217_s9, %s682_s14  ;;  %p685_p3 = scmp.lt.s32.totalorder %s683_s15, %s676_s12 }
  0x18   : > { %p680_p1 = pneg %p679_p0 }
  0x19   : > { %p686_p4 = por %p685_p3, %p684_p2 }
  0x1b   : > { %p687_p5 = pnand %p686_p4, %p680_p1 }
  0x1d   : > { %690 = shalt.err (!%p687_p5)
}
  0x1e   : > { %602 = dma.hbm_to_vmem [thread:$0]  (!%p865_p9), %s214_s7, 128, %s217_s9, %s203_s11  }
  0x1f   : > { %p883_p6 = pnand %p585_p10, %p242_p11  ;;  %s235_s25 = scalar_lea.hbm %s958_s1, %s582_s29 }
  0x20   : > { %s227_s5 = scalar_lea.vmem [#allocation4], %s581_s30  ;;  %s224_s8 = scalar_lea.sflag [#allocation5], %s856_s28 }
  0x21   : > { %s237_s6 = sshll.u32 %s227_s5, 4  ;;  %s776_s7 = smov [#allocation4]   ;;  %s238_s6 = int_to_ptr.vmem [resolvable:$true] %s237_s6 }
  0x22   : > { %s704_s12 = scalar_lea.vmem %s238_s6, 128  ;;  %s709_s9 = sshll.u32 %s776_s7, 4  ;;  %s710_s9 = int_to_ptr.vmem [resolvable:$false] %s709_s9 }
  0x23   : > { %p705_p8 = scmp.ne.s32.totalorder %s238_s6, %s704_s12  ;;  %s711_s11 = scalar_lea.vmem %s710_s9, 256 }
  0x24   : > { %p712_p10 = scmp.lt.s32.totalorder %s238_s6, %s710_s9  ;;  %p713_p11 = scmp.lt.s32.totalorder %s711_s11, %s704_s12 }
  0x25   : > { %p707_p13 = pnand %p705_p8, %p665_p12 }
  0x26   : > { %p714_p1 = por %p713_p11, %p712_p10 }
  0x27   : > { %p708_p0 = pneg %p707_p13 }
  0x29   : > { %p715_p2 = pnand %p714_p1, %p708_p0 }
  0x2b   : > { %718 = shalt.err (!%p715_p2)
}
  0x2c   : > { %605 = dma.hbm_to_vmem [thread:$0]  (!%p865_p9), %s235_s25, 128, %s238_s6, %s224_s8  }
  0x2d   : > { %246 = sbr.rel (%p883_p6) target bundleno = 256 (0x100), region = 28  ;;  %s248_s28 = sand.u32 (!%p883_p6), 1, %s757_s16  }
  0x2e   : > { %s586_s29 = sshll.u32 (!%p883_p6), %s248_s28, 3  ;;  %s249_s30 = scalar_lea.sflag (!%p883_p6), [#allocation3], %s248_s28 }
  0x2f   : > { %s252_s13 = scalar_lea.vmem (!%p883_p6), [#allocation2], %s586_s29 }
  0x32   : > { %744 = dma.done.wait (%p847_p7), %s249_s30, 128  }
  0x33   : > { %746 = vsyncadd (%p847_p7), %s249_s30, 4294967168  ;;  %s258_s14 = scalar_lea.sflag [#allocation5], %s248_s28  ;;  %s261_s15 = scalar_lea.vmem [#allocation4], %s586_s29 }
  0x34   : > { %748 = dma.done.wait (%p847_p7), %s258_s14, 128  }
  0x35   : > { %750 = vsyncadd (%p847_p7), %s258_s14, 4294967168  ;;  %p309_p9 = scmp.lt.s32.totalorder %s765_s18, 1  ;;  %vm334_vm0 = vcmask 7168   ;;  %v777_v0 = vmov 0.0   ;;  %v339_v1 = vld [vmem:[%s261_s15] sm:$0xff]  ;;  %v338_v2 = vld [vmem:[%s252_s13] sm:$0xff] }
  0x36   : > { %vm341_vm1 = vcmp.ne.f32.partialorder %v339_v1, -1.0  ;;  %v592_v3 = vmul.f32 -1.442695, %v338_v2  ;;  %vm340_vm2 = vcmp.gt.f32.partialorder %v339_v1, 0.5  ;;  %v778_v16 = vmov 0.75  }
  0x37   : > { %s974_s18 = smov (!%p309_p9, %s765_s18), 1  ;;  %v591_v4 = vsel %vm341_vm1, 1.0, %v777_v0  ;;  %v352_v17 = vsel %vm340_vm2, 0.25, %v778_v16 }
  0x38   : > { %s909_s10 = sshll.u32 %s974_s18, 3  ;;  %365 = vadd.xlane.f32.xlu0 %v591_v4  ;;  %657 = vpow2.f32 %v592_v3  ;;  %v353_v18 = vmul.f32 %v591_v4, %v352_v17 }
  0x39   : > { %s915_s24 = scalar_lea.vmem %s959_s2, %s909_s10  ;;  %s923_s25 = scalar_lea.vmem %s960_s3, %s909_s10 }
  0x3a   : > { %335 = vst.msk [vmem:[%s915_s24] sm:$0xff] %vm334_vm0, %v777_v0  ;;  %336 = vst.msk [vmem:[%s923_s25] sm:$0xff] %vm334_vm0, %v777_v0  ;;  %s329_s8 = scalar_lea.vmem %s961_s4, %s909_s10 }
  0x3b   : > { %337 = vst.msk [vmem:[%s329_s8] sm:$0xff] %vm334_vm0, %v777_v0 }
  0x41   : > { %v364_v23 = vld [vmem:[%s915_s24] sm:$0xff] }
  0x42   : > { %v370_v26 = vld [vmem:[%s923_s25] sm:$0xff] }
  0x43   : > { %v375_v29 = vld [vmem:[%s329_s8] sm:$0xff] }
  0x45   : > { %v658_v5 = vpop.eup %657 }
  0x46   : > { %v347_v6 = vadd.f32 1.0, %v658_v5 }
  0x48   : > { %659 = vrcp.f32 %v347_v6 }
  0x55   : > { %v660_v7 = vpop.eup %659 }
  0x56   : > { %v350_v8 = vsub.f32 %v339_v1, %v660_v7 }
  0x58   : > { %v351_v9 = vand.u32 2147483647, %v350_v8 }
  0x5a   : > { %v354_v10 = vsub.f32 1.0, %v351_v9 }
  0x5c   : > { %v355_v11 = vsel %vm341_vm1, %v354_v10, 1.0 }
  0x5d   : > { %v359_v12 = vadd.f32 1e-12, %v355_v11  ;;  %v356_v13 = vsub.f32 1.0, %v355_v11 }
  0x5f   : > { %v360_v14 = vmin.f32 %v359_v12, 1.0  ;;  %v357_v15 = vmul.f32 %v356_v13, %v356_v13 }
  0x61   : > { %661 = vlog2.f32 %v360_v14  ;;  %371 = vadd.xlane.f32.xlu0 %v357_v15  ;;  %v358_v19 = vmul.f32 %v357_v15, %v353_v18 }
  0x6e   : > { %v662_v20 = vpop.eup %661 }
  0x6f   : > { %v362_v21 = vmul.f32 0.6931472, %v662_v20 }
  0x71   : > { %v363_v22 = vmul.f32 %v362_v21, %v358_v19 }
  0x73   : > { %376 = vadd.xlane.f32.xlu1 %v363_v22 }
  0xc1   : > { %v366_v24 = vpop.xlane.xlu0 %365 }
  0xc2   : > { %v367_v25 = vadd.f32 %v366_v24, %v364_v23 }
  0xc4   : > { %369 = vst.msk [vmem:[%s915_s24] sm:$0xff] %vm334_vm0, %v367_v25 }
  0xea   : > { %v372_v27 = vpop.xlane.xlu0 %371 }
  0xeb   : > { %v373_v28 = vadd.f32 %v372_v27, %v370_v26 }
  0xed   : > { %374 = vst.msk [vmem:[%s923_s25] sm:$0xff] %vm334_vm0, %v373_v28 }
  0xfc   : > { %v377_v30 = vpop.xlane.xlu1 %376 }
  0xfd   : > { %v378_v31 = vadd.f32 %v377_v30, %v375_v29 }
  0xff   : > { %379 = vst.msk [vmem:[%s329_s8] sm:$0xff] %vm334_vm0, %v378_v31 }
 0x100 PF: > { %s21_s20 = sadd.s32 1, %s773_s20   ;;  %s966_s15 = smov %s757_s16 }
 0x101   : > { %p18_p7 = scmp.ge.s32.totalorder %s21_s20, 4   ;;  %s967_s16 = smov %s761_s17 }
 0x102   : > { %s968_s17 = smov %s853_s27  ;;  %s969_s18 = smov %s769_s19 }
 0x103   : > { %s970_s19 = smov %s972_s22  ;;  %20 = sbr.rel (!%p18_p7) target bundleno = 6 (0x6), region = 109 }
 0x108   :  { %445 = vsyncpa [#allocation3], 1 }
 0x109   :  { %447 = vsyncpa [#allocation3 + $0x1], 1 }
 0x10a   :  { %448 = vsyncpa [#allocation5], 1 }
 0x10b   :  { %450 = vsyncpa [#allocation5 + $0x1], 1 }

</bundles_post_ra>
